<compile_context>
chip_gen: v7x
topology: tpu7x:2x2x1
jax: 0.10.0
libtpu: 0.0.40
codegen_flags: <defaults>
</compile_context>

<pallas_src>
import math
import jax
import jax.numpy as jnp
from jax import lax
from jax.experimental import pallas as pl
from jax.experimental.pallas import tpu as pltpu

OUT_LANES = 128  # packed output row: [pred_r | pred_c(agent 0..N-1) | zeros]


def _rows_tile(t, n):
    # Tile a (B, C) row-block n times along the sublane axis -> (n*B, C).
    return jnp.concatenate([t] * n, axis=0)


# ---------------------------------------------------------------------------
# Fused kernel: gat1 -> gat2 -> reward head -> cost head for one batch tile.
# Rows are agent-major: row r = i*B + b  (agent i, batch element b).
# ---------------------------------------------------------------------------
def make_fused_kernel(B, N, HO):
    R = B * N
    HO2, HO3 = 2 * HO, 3 * HO

    def kernel(x_ref, wc1_ref, wc2_ref, rw1_ref, cw1_ref, small_ref, o_ref):
        small = small_ref[...]                    # (8, 128) f32 packed small params
        b1_row  = small[0:1, :HO]                 # gat1 bias
        b2_row  = small[1:2, :HO]                 # gat2 bias
        rb1_row = small[2:3, :HO]                 # reward head hidden bias
        cb1_row = small[3:4, :HO]                 # cost head hidden bias
        rw2_row = small[4:5, :HO]                 # reward head final row
        cw2_row = small[5:6, :HO]                 # cost head final row
        rb2 = small[6:7, 0:1]
        cb2 = small[6:7, 1:2]

        def gat_layer(xin_bf16, wc_ref, bias_row):
            # One MXU pass: [proj | s_src(exp over O) | s_tgt(exp over O)]  -> (R, 3*HO) f32
            full = jnp.dot(xin_bf16, wc_ref[...], preferred_element_type=jnp.float32)
            proj  = full[:, :HO]                  # (R, HO) head-major (h*O+o) features
            s_src = full[:, HO:HO2]               # (R, HO): per-head src score broadcast over O lanes
            s_tgt = full[:, HO2:HO3]              # (R, HO): per-head tgt score broadcast over O lanes

            # Scores per target agent j (unrolled, N slabs of (R, HO)); softmax over j is
            # pure elementwise VPU/EUP work (no cross-lane reductions).
            e = []
            for j in range(N):
                t_j = _rows_tile(s_tgt[j * B:(j + 1) * B, :], N)   # agent-j block -> all query rows
                ej = s_src + t_j
                e.append(jnp.where(ej > 0.0, ej, 0.2 * ej))        # LeakyReLU(0.2)
            m = e[0]
            for j in range(1, N):
                m = jnp.maximum(m, e[j])
            p = [jnp.exp(e[j] - m) for j in range(N)]
            denom = p[0]
            for j in range(1, N):
                denom = denom + p[j]
            inv = pl.reciprocal(denom, approx=True)                # EUP, frees VALU slots

            # Aggregation: unrolled FMA over j (no matmul, data already in vregs).
            acc = p[0] * _rows_tile(proj[0:B, :], N)
            for j in range(1, N):
                acc = acc + p[j] * _rows_tile(proj[j * B:(j + 1) * B, :], N)
            out = acc * inv + bias_row                             # softmax-normalize + bias
            # ELU(alpha=1); clamp exp arg so the discarded branch stays finite.
            return jnp.where(out > 0.0, out, jnp.exp(jnp.minimum(out, 0.0)) - 1.0)

        x2d = x_ref[...].reshape(R, -1)                            # (R, Fin) bf16, agent-major rows
        h1 = gat_layer(x2d, wc1_ref, b1_row)                       # (R, HO) f32
        h2 = gat_layer(h1.astype(jnp.bfloat16), wc2_ref, b2_row)   # (R, HO) f32
        h2_bf = h2.astype(jnp.bfloat16)

        # ---- reward head: Linear(N*HO -> HO) (agent-blocked) -> ReLU -> Linear(HO -> 1) ----
        r_acc = jnp.dot(h2_bf[0:B, :], rw1_ref[0:HO, :], preferred_element_type=jnp.float32)
        for i in range(1, N):
            r_acc = r_acc + jnp.dot(h2_bf[i * B:(i + 1) * B, :],
                                    rw1_ref[i * HO:(i + 1) * HO, :],
                                    preferred_element_type=jnp.float32)
        r_hid = jnp.maximum(r_acc + rb1_row, 0.0)                  # (B, HO)
        pred_r = jnp.sum(r_hid * rw2_row, axis=-1, keepdims=True) + rb2      # (B, 1)

        # ---- cost head: per-agent Linear(HO -> HO) -> ReLU -> Linear(HO -> 1) ----
        c_hid = jnp.maximum(jnp.dot(h2_bf, cw1_ref[...],
                                    preferred_element_type=jnp.float32) + cb1_row, 0.0)
        pc = jnp.sum(c_hid * cw2_row, axis=-1, keepdims=True) + cb2          # (R, 1)

        # Lane-dense packed output row, built with iota selects (no concat, no pad tensor).
        lanes = lax.broadcasted_iota(jnp.int32, (B, OUT_LANES), 1)
        row = jnp.where(lanes == 0, pred_r, 0.0)
        for i in range(N):
            row = jnp.where(lanes == 1 + i, pc[i * B:(i + 1) * B, :], row)
        o_ref[...] = row

    return kernel


# ---------------------------------------------------------------------------
# Forward wrapper: 1-D grid over the batch, weights resident, activations tiled.
# ---------------------------------------------------------------------------
def _pick_bn_tile(bn, cap=256):
    if bn <= cap:
        return bn
    best = None
    for t in range(cap, 0, -1):
        if bn % t == 0:
            if t % 16 == 0:       # keep bf16 / (8,128) tiling happy
                return t
            if best is None:
                best = t
    return best


def gat_critic_forward(params, x):
    bn, N, fin = x.shape
    hid = params["cw1"].shape[0]
    assert N <= OUT_LANES - 1, "output packing assumes n_agents <= 127"
    B = _pick_bn_tile(bn)
    kernel = make_fused_kernel(B, N, hid)

    # Agent-major activation layout: (N, bn, Fin); batch is the tiled (middle) axis.
    x3 = jnp.transpose(x, (1, 0, 2)).astype(jnp.bfloat16)

    out = pl.pallas_call(
        kernel,
        out_shape=jax.ShapeDtypeStruct((bn, OUT_LANES), jnp.float32),
        grid_spec=pltpu.PrefetchScalarGridSpec(
            num_scalar_prefetch=0,
            grid=(bn // B,),
            in_specs=[
                pl.BlockSpec((N, B, fin), lambda g: (0, g, 0)),        # batch-tiled activations
                pl.BlockSpec(params["wc1"].shape, lambda g: (0, 0)),   # resident weights
                pl.BlockSpec(params["wc2"].shape, lambda g: (0, 0)),
                pl.BlockSpec(params["rw1"].shape, lambda g: (0, 0)),
                pl.BlockSpec(params["cw1"].shape, lambda g: (0, 0)),
                pl.BlockSpec(params["small"].shape, lambda g: (0, 0)),
            ],
            out_specs=pl.BlockSpec((B, OUT_LANES), lambda g: (g, 0)),
        ),
        compiler_params=pltpu.CompilerParams(
            dimension_semantics=("parallel",),      # shard batch tiles across v7x's 2 TCs
            vmem_limit_bytes=48 * 1024 * 1024,      # fits v7x 64 MiB physical, raises v5e default
        ),
    )(x3, params["wc1"], params["wc2"], params["rw1"], params["cw1"], params["small"])

    pred_r = out[:, 0:1]                            # (bn, 1)
    pred_c = out[:, 1:1 + N].reshape(bn, N, 1)      # (bn, N, 1)
    return pred_r, pred_c


# ---------------------------------------------------------------------------
# Parameter construction (deterministic, xavier-normal-ish).
# ---------------------------------------------------------------------------
def _xavier_normal(key, shape, fan_in, fan_out):
    std = math.sqrt(2.0 / (fan_in + fan_out))
    return (jax.random.normal(key, shape) * std).astype(jnp.float32)


def make_gat_weight(key, fin, H, O):
    """[W | W@Asrc expanded-over-O | W@Atgt expanded-over-O]  ->  (fin, 3*H*O)."""
    HO = H * O
    k1, k2, k3 = jax.random.split(key, 3)
    w = _xavier_normal(k1, (fin, HO), fin, HO)        # head-major (h*O+o) columns
    a_src = _xavier_normal(k2, (H, O), O, H)          # score_fn_source (H, O, 1)
    a_tgt = _xavier_normal(k3, (H, O), O, H)          # score_fn_target (H, O, 1)
    w3 = w.reshape(fin, H, O)
    src_cols = jnp.einsum("fho,ho->fh", w3, a_src)    # (fin, H)
    tgt_cols = jnp.einsum("fho,ho->fh", w3, a_tgt)
    src_exp = jnp.repeat(src_cols, O, axis=1)         # (fin, HO): same value across a head's O lanes
    tgt_exp = jnp.repeat(tgt_cols, O, axis=1)
    return jnp.concatenate([w, src_exp, tgt_exp], axis=1)


def init_params(key, in_features, hid, H, N):
    assert hid % H == 0 and hid <= OUT_LANES
    O = hid // H
    ks = jax.random.split(key, 10)
    wc1 = make_gat_weight(ks[0], in_features, H, O)             # (fin, 3*hid)
    wc2 = make_gat_weight(ks[1], hid, H, O)                     # (hid, 3*hid)
    rw1 = _xavier_normal(ks[2], (N * hid, hid), N * hid, hid)   # reward Linear(N*hid, hid)
    rw2 = _xavier_normal(ks[3], (hid,), hid, 1)                 # reward Linear(hid, 1) row
    cw1 = _xavier_normal(ks[4], (hid, hid), hid, hid)           # cost   Linear(hid, hid)
    cw2 = _xavier_normal(ks[5], (hid,), hid, 1)                 # cost   Linear(hid, 1) row

    lim_r = 1.0 / math.sqrt(N * hid)
    lim_h = 1.0 / math.sqrt(hid)
    rb1 = jax.random.uniform(ks[6], (hid,), jnp.float32, -lim_r, lim_r)
    rb2 = jax.random.uniform(ks[7], (), jnp.float32, -lim_h, lim_h)
    cb1 = jax.random.uniform(ks[8], (hid,), jnp.float32, -lim_h, lim_h)
    cb2 = jax.random.uniform(ks[9], (), jnp.float32, -lim_h, lim_h)

    # Pack all small params into a single (8, 128) f32 tile (one DMA descriptor).
    # rows: 0=gat1 bias, 1=gat2 bias (zeros per nn.init.zeros_), 2=rb1, 3=cb1, 4=rw2, 5=cw2,
    # row 6: lane0=rb2, lane1=cb2.
    small = jnp.zeros((8, 128), jnp.float32)
    small = small.at[2, :hid].set(rb1).at[3, :hid].set(cb1)
    small = small.at[4, :hid].set(rw2).at[5, :hid].set(cw2)
    small = small.at[6, 0].set(rb2).at[6, 1].set(cb2)

    return dict(
        wc1=wc1.astype(jnp.bfloat16),
        wc2=wc2.astype(jnp.bfloat16),
        rw1=rw1.astype(jnp.bfloat16),
        cw1=cw1.astype(jnp.bfloat16),
        small=small,
    )


if __name__ == "__main__":
    key = jax.random.PRNGKey(0)
    bn, n_agents, in_features = 2, 4, 16
    hid_size, head_num = 32, 4

    kx, kp = jax.random.split(key)
    x = jax.random.normal(kx, (bn, n_agents, in_features), jnp.float32)
    params = init_params(kp, in_features, hid_size, head_num, n_agents)

    pred_r, pred_c = gat_critic_forward(params, x)
    jax.block_until_ready((pred_r, pred_c))
    assert pred_r.shape == (bn, 1)
    assert pred_c.shape == (bn, n_agents, 1)
    assert bool(jnp.all(jnp.isfinite(pred_r))) and bool(jnp.all(jnp.isfinite(pred_c)))
    print("KERNEL_OK")
</pallas_src>

<mosaic_0001>
module attributes {stable_mosaic.version = 11 : i64} {
  func.func @kernel(%arg0: i32, %arg1: memref<4x2x16xbf16, #tpu.memory_space<vmem>>, %arg2: memref<16x96xbf16, #tpu.memory_space<vmem>>, %arg3: memref<32x96xbf16, #tpu.memory_space<vmem>>, %arg4: memref<128x32xbf16, #tpu.memory_space<vmem>>, %arg5: memref<32x32xbf16, #tpu.memory_space<vmem>>, %arg6: memref<8x128xf32, #tpu.memory_space<vmem>>, %arg7: memref<2x128xf32, #tpu.memory_space<vmem>>) attributes {dimension_semantics = [#tpu.dimension_semantics<parallel>], iteration_bounds = array<i64: 1>, scalar_prefetch = 0 : i64, scratch_operands = 0 : i64, tpu.core_type = #tpu.core_type<tc>, window_params = [{transform_indices = @transform_0, window_bounds = array<i64: 4, 2, 16>}, {pipeline_mode = #tpu.pipeline_mode<synchronous>, transform_indices = @transform_1, window_bounds = array<i64: 16, 96>}, {pipeline_mode = #tpu.pipeline_mode<synchronous>, transform_indices = @transform_2, window_bounds = array<i64: 32, 96>}, {pipeline_mode = #tpu.pipeline_mode<synchronous>, transform_indices = @transform_3, window_bounds = array<i64: 128, 32>}, {pipeline_mode = #tpu.pipeline_mode<synchronous>, transform_indices = @transform_4, window_bounds = array<i64: 32, 32>}, {pipeline_mode = #tpu.pipeline_mode<synchronous>, transform_indices = @transform_5, window_bounds = array<i64: 8, 128>}, {transform_indices = @transform_6, window_bounds = array<i64: 2, 128>}]} {
    %c0 = arith.constant 0 : index
    %c0_0 = arith.constant 0 : index
    %0 = vector.load %arg6[%c0, %c0_0] : memref<8x128xf32, #tpu.memory_space<vmem>>, vector<8x128xf32>
    %1 = vector.extract_strided_slice %0 {offsets = [0, 0], sizes = [1, 32], strides = [1, 1]} : vector<8x128xf32> to vector<1x32xf32>
    %2 = vector.extract_strided_slice %0 {offsets = [1, 0], sizes = [1, 32], strides = [1, 1]} : vector<8x128xf32> to vector<1x32xf32>
    %3 = vector.extract_strided_slice %0 {offsets = [2, 0], sizes = [1, 32], strides = [1, 1]} : vector<8x128xf32> to vector<1x32xf32>
    %4 = vector.extract_strided_slice %0 {offsets = [3, 0], sizes = [1, 32], strides = [1, 1]} : vector<8x128xf32> to vector<1x32xf32>
    %5 = vector.extract_strided_slice %0 {offsets = [4, 0], sizes = [1, 32], strides = [1, 1]} : vector<8x128xf32> to vector<1x32xf32>
    %6 = vector.extract_strided_slice %0 {offsets = [5, 0], sizes = [1, 32], strides = [1, 1]} : vector<8x128xf32> to vector<1x32xf32>
    %7 = vector.extract_strided_slice %0 {offsets = [6, 0], sizes = [1, 1], strides = [1, 1]} : vector<8x128xf32> to vector<1x1xf32>
    %8 = vector.extract_strided_slice %0 {offsets = [6, 1], sizes = [1, 1], strides = [1, 1]} : vector<8x128xf32> to vector<1x1xf32>
    %c0_1 = arith.constant 0 : index
    %c0_2 = arith.constant 0 : index
    %c0_3 = arith.constant 0 : index
    %9 = vector.load %arg1[%c0_1, %c0_2, %c0_3] : memref<4x2x16xbf16, #tpu.memory_space<vmem>>, vector<4x2x16xbf16>
    %10 = vector.shape_cast %9 : vector<4x2x16xbf16> to vector<8x16xbf16>
    %c0_4 = arith.constant 0 : index
    %c0_5 = arith.constant 0 : index
    %11 = vector.load %arg2[%c0_4, %c0_5] : memref<16x96xbf16, #tpu.memory_space<vmem>>, vector<16x96xbf16>
    %cst = arith.constant dense<0.000000e+00> : vector<8x96xf32>
    %12 = tpu.matmul %10, %11, %cst {dimension_numbers = #tpu.dot_dimension_numbers<[1], [0], [0], [1], [0, 0, 1, 1], [], []>} : vector<8x16xbf16>, vector<16x96xbf16>, vector<8x96xf32> -> vector<8x96xf32>
    %13 = vector.extract_strided_slice %12 {offsets = [0, 0], sizes = [8, 32], strides = [1, 1]} : vector<8x96xf32> to vector<8x32xf32>
    %14 = vector.extract_strided_slice %12 {offsets = [0, 32], sizes = [8, 32], strides = [1, 1]} : vector<8x96xf32> to vector<8x32xf32>
    %15 = vector.extract_strided_slice %12 {offsets = [0, 64], sizes = [8, 32], strides = [1, 1]} : vector<8x96xf32> to vector<8x32xf32>
    %16 = vector.extract_strided_slice %15 {offsets = [0, 0], sizes = [2, 32], strides = [1, 1]} : vector<8x32xf32> to vector<2x32xf32>
    %17 = tpu.concatenate %16, %16, %16, %16 in 0 : vector<2x32xf32>, vector<2x32xf32>, vector<2x32xf32>, vector<2x32xf32> -> vector<8x32xf32>
    %18 = arith.addf %14, %17 : vector<8x32xf32>
    %cst_6 = arith.constant 0.000000e+00 : f32
    %19 = vector.broadcast %cst_6 : f32 to vector<8x32xf32>
    %20 = arith.cmpf ogt, %18, %19 : vector<8x32xf32>
    %cst_7 = arith.constant 2.000000e-01 : f32
    %21 = vector.broadcast %cst_7 : f32 to vector<8x32xf32>
    %22 = arith.mulf %21, %18 : vector<8x32xf32>
    %23 = arith.select %20, %18, %22 : vector<8x32xi1>, vector<8x32xf32>
    %24 = vector.extract_strided_slice %15 {offsets = [2, 0], sizes = [2, 32], strides = [1, 1]} : vector<8x32xf32> to vector<2x32xf32>
    %25 = tpu.concatenate %24, %24, %24, %24 in 0 : vector<2x32xf32>, vector<2x32xf32>, vector<2x32xf32>, vector<2x32xf32> -> vector<8x32xf32>
    %26 = arith.addf %14, %25 : vector<8x32xf32>
    %cst_8 = arith.constant 0.000000e+00 : f32
    %27 = vector.broadcast %cst_8 : f32 to vector<8x32xf32>
    %28 = arith.cmpf ogt, %26, %27 : vector<8x32xf32>
    %cst_9 = arith.constant 2.000000e-01 : f32
    %29 = vector.broadcast %cst_9 : f32 to vector<8x32xf32>
    %30 = arith.mulf %29, %26 : vector<8x32xf32>
    %31 = arith.select %28, %26, %30 : vector<8x32xi1>, vector<8x32xf32>
    %32 = vector.extract_strided_slice %15 {offsets = [4, 0], sizes = [2, 32], strides = [1, 1]} : vector<8x32xf32> to vector<2x32xf32>
    %33 = tpu.concatenate %32, %32, %32, %32 in 0 : vector<2x32xf32>, vector<2x32xf32>, vector<2x32xf32>, vector<2x32xf32> -> vector<8x32xf32>
    %34 = arith.addf %14, %33 : vector<8x32xf32>
    %cst_10 = arith.constant 0.000000e+00 : f32
    %35 = vector.broadcast %cst_10 : f32 to vector<8x32xf32>
    %36 = arith.cmpf ogt, %34, %35 : vector<8x32xf32>
    %cst_11 = arith.constant 2.000000e-01 : f32
    %37 = vector.broadcast %cst_11 : f32 to vector<8x32xf32>
    %38 = arith.mulf %37, %34 : vector<8x32xf32>
    %39 = arith.select %36, %34, %38 : vector<8x32xi1>, vector<8x32xf32>
    %40 = vector.extract_strided_slice %15 {offsets = [6, 0], sizes = [2, 32], strides = [1, 1]} : vector<8x32xf32> to vector<2x32xf32>
    %41 = tpu.concatenate %40, %40, %40, %40 in 0 : vector<2x32xf32>, vector<2x32xf32>, vector<2x32xf32>, vector<2x32xf32> -> vector<8x32xf32>
    %42 = arith.addf %14, %41 : vector<8x32xf32>
    %cst_12 = arith.constant 0.000000e+00 : f32
    %43 = vector.broadcast %cst_12 : f32 to vector<8x32xf32>
    %44 = arith.cmpf ogt, %42, %43 : vector<8x32xf32>
    %cst_13 = arith.constant 2.000000e-01 : f32
    %45 = vector.broadcast %cst_13 : f32 to vector<8x32xf32>
    %46 = arith.mulf %45, %42 : vector<8x32xf32>
    %47 = arith.select %44, %42, %46 : vector<8x32xi1>, vector<8x32xf32>
    %48 = arith.maximumf %23, %31 : vector<8x32xf32>
    %49 = arith.maximumf %48, %39 : vector<8x32xf32>
    %50 = arith.maximumf %49, %47 : vector<8x32xf32>
    %51 = arith.subf %23, %50 : vector<8x32xf32>
    %52 = math.exp %51 : vector<8x32xf32>
    %53 = arith.subf %31, %50 : vector<8x32xf32>
    %54 = math.exp %53 : vector<8x32xf32>
    %55 = arith.subf %39, %50 : vector<8x32xf32>
    %56 = math.exp %55 : vector<8x32xf32>
    %57 = arith.subf %47, %50 : vector<8x32xf32>
    %58 = math.exp %57 : vector<8x32xf32>
    %59 = arith.addf %52, %54 : vector<8x32xf32>
    %60 = arith.addf %59, %56 : vector<8x32xf32>
    %61 = arith.addf %60, %58 : vector<8x32xf32>
    %62 = tpu.reciprocal %61 {approx = true} : vector<8x32xf32> -> vector<8x32xf32>
    %63 = vector.extract_strided_slice %13 {offsets = [0, 0], sizes = [2, 32], strides = [1, 1]} : vector<8x32xf32> to vector<2x32xf32>
    %64 = tpu.concatenate %63, %63, %63, %63 in 0 : vector<2x32xf32>, vector<2x32xf32>, vector<2x32xf32>, vector<2x32xf32> -> vector<8x32xf32>
    %65 = arith.mulf %52, %64 : vector<8x32xf32>
    %66 = vector.extract_strided_slice %13 {offsets = [2, 0], sizes = [2, 32], strides = [1, 1]} : vector<8x32xf32> to vector<2x32xf32>
    %67 = tpu.concatenate %66, %66, %66, %66 in 0 : vector<2x32xf32>, vector<2x32xf32>, vector<2x32xf32>, vector<2x32xf32> -> vector<8x32xf32>
    %68 = arith.mulf %54, %67 : vector<8x32xf32>
    %69 = arith.addf %65, %68 : vector<8x32xf32>
    %70 = vector.extract_strided_slice %13 {offsets = [4, 0], sizes = [2, 32], strides = [1, 1]} : vector<8x32xf32> to vector<2x32xf32>
    %71 = tpu.concatenate %70, %70, %70, %70 in 0 : vector<2x32xf32>, vector<2x32xf32>, vector<2x32xf32>, vector<2x32xf32> -> vector<8x32xf32>
    %72 = arith.mulf %56, %71 : vector<8x32xf32>
    %73 = arith.addf %69, %72 : vector<8x32xf32>
    %74 = vector.extract_strided_slice %13 {offsets = [6, 0], sizes = [2, 32], strides = [1, 1]} : vector<8x32xf32> to vector<2x32xf32>
    %75 = tpu.concatenate %74, %74, %74, %74 in 0 : vector<2x32xf32>, vector<2x32xf32>, vector<2x32xf32>, vector<2x32xf32> -> vector<8x32xf32>
    %76 = arith.mulf %58, %75 : vector<8x32xf32>
    %77 = arith.addf %73, %76 : vector<8x32xf32>
    %78 = arith.mulf %77, %62 : vector<8x32xf32>
    %79 = vector.broadcast %1 : vector<1x32xf32> to vector<8x32xf32>
    %80 = arith.addf %78, %79 : vector<8x32xf32>
    %cst_14 = arith.constant 0.000000e+00 : f32
    %81 = vector.broadcast %cst_14 : f32 to vector<8x32xf32>
    %82 = arith.cmpf ogt, %80, %81 : vector<8x32xf32>
    %cst_15 = arith.constant 0.000000e+00 : f32
    %83 = vector.broadcast %cst_15 : f32 to vector<8x32xf32>
    %84 = arith.minimumf %80, %83 : vector<8x32xf32>
    %85 = math.exp %84 : vector<8x32xf32>
    %cst_16 = arith.constant 1.000000e+00 : f32
    %86 = vector.broadcast %cst_16 : f32 to vector<8x32xf32>
    %87 = arith.subf %85, %86 : vector<8x32xf32>
    %88 = arith.select %82, %80, %87 : vector<8x32xi1>, vector<8x32xf32>
    %89 = arith.truncf %88 : vector<8x32xf32> to vector<8x32xbf16>
    %c0_17 = arith.constant 0 : index
    %c0_18 = arith.constant 0 : index
    %90 = vector.load %arg3[%c0_17, %c0_18] : memref<32x96xbf16, #tpu.memory_space<vmem>>, vector<32x96xbf16>
    %cst_19 = arith.constant dense<0.000000e+00> : vector<8x96xf32>
    %91 = tpu.matmul %89, %90, %cst_19 {dimension_numbers = #tpu.dot_dimension_numbers<[1], [0], [0], [1], [0, 0, 1, 1], [], []>} : vector<8x32xbf16>, vector<32x96xbf16>, vector<8x96xf32> -> vector<8x96xf32>
    %92 = vector.extract_strided_slice %91 {offsets = [0, 0], sizes = [8, 32], strides = [1, 1]} : vector<8x96xf32> to vector<8x32xf32>
    %93 = vector.extract_strided_slice %91 {offsets = [0, 32], sizes = [8, 32], strides = [1, 1]} : vector<8x96xf32> to vector<8x32xf32>
    %94 = vector.extract_strided_slice %91 {offsets = [0, 64], sizes = [8, 32], strides = [1, 1]} : vector<8x96xf32> to vector<8x32xf32>
    %95 = vector.extract_strided_slice %94 {offsets = [0, 0], sizes = [2, 32], strides = [1, 1]} : vector<8x32xf32> to vector<2x32xf32>
    %96 = tpu.concatenate %95, %95, %95, %95 in 0 : vector<2x32xf32>, vector<2x32xf32>, vector<2x32xf32>, vector<2x32xf32> -> vector<8x32xf32>
    %97 = arith.addf %93, %96 : vector<8x32xf32>
    %cst_20 = arith.constant 0.000000e+00 : f32
    %98 = vector.broadcast %cst_20 : f32 to vector<8x32xf32>
    %99 = arith.cmpf ogt, %97, %98 : vector<8x32xf32>
    %cst_21 = arith.constant 2.000000e-01 : f32
    %100 = vector.broadcast %cst_21 : f32 to vector<8x32xf32>
    %101 = arith.mulf %100, %97 : vector<8x32xf32>
    %102 = arith.select %99, %97, %101 : vector<8x32xi1>, vector<8x32xf32>
    %103 = vector.extract_strided_slice %94 {offsets = [2, 0], sizes = [2, 32], strides = [1, 1]} : vector<8x32xf32> to vector<2x32xf32>
    %104 = tpu.concatenate %103, %103, %103, %103 in 0 : vector<2x32xf32>, vector<2x32xf32>, vector<2x32xf32>, vector<2x32xf32> -> vector<8x32xf32>
    %105 = arith.addf %93, %104 : vector<8x32xf32>
    %cst_22 = arith.constant 0.000000e+00 : f32
    %106 = vector.broadcast %cst_22 : f32 to vector<8x32xf32>
    %107 = arith.cmpf ogt, %105, %106 : vector<8x32xf32>
    %cst_23 = arith.constant 2.000000e-01 : f32
    %108 = vector.broadcast %cst_23 : f32 to vector<8x32xf32>
    %109 = arith.mulf %108, %105 : vector<8x32xf32>
    %110 = arith.select %107, %105, %109 : vector<8x32xi1>, vector<8x32xf32>
    %111 = vector.extract_strided_slice %94 {offsets = [4, 0], sizes = [2, 32], strides = [1, 1]} : vector<8x32xf32> to vector<2x32xf32>
    %112 = tpu.concatenate %111, %111, %111, %111 in 0 : vector<2x32xf32>, vector<2x32xf32>, vector<2x32xf32>, vector<2x32xf32> -> vector<8x32xf32>
    %113 = arith.addf %93, %112 : vector<8x32xf32>
    %cst_24 = arith.constant 0.000000e+00 : f32
    %114 = vector.broadcast %cst_24 : f32 to vector<8x32xf32>
    %115 = arith.cmpf ogt, %113, %114 : vector<8x32xf32>
    %cst_25 = arith.constant 2.000000e-01 : f32
    %116 = vector.broadcast %cst_25 : f32 to vector<8x32xf32>
    %117 = arith.mulf %116, %113 : vector<8x32xf32>
    %118 = arith.select %115, %113, %117 : vector<8x32xi1>, vector<8x32xf32>
    %119 = vector.extract_strided_slice %94 {offsets = [6, 0], sizes = [2, 32], strides = [1, 1]} : vector<8x32xf32> to vector<2x32xf32>
    %120 = tpu.concatenate %119, %119, %119, %119 in 0 : vector<2x32xf32>, vector<2x32xf32>, vector<2x32xf32>, vector<2x32xf32> -> vector<8x32xf32>
    %121 = arith.addf %93, %120 : vector<8x32xf32>
    %cst_26 = arith.constant 0.000000e+00 : f32
    %122 = vector.broadcast %cst_26 : f32 to vector<8x32xf32>
    %123 = arith.cmpf ogt, %121, %122 : vector<8x32xf32>
    %cst_27 = arith.constant 2.000000e-01 : f32
    %124 = vector.broadcast %cst_27 : f32 to vector<8x32xf32>
    %125 = arith.mulf %124, %121 : vector<8x32xf32>
    %126 = arith.select %123, %121, %125 : vector<8x32xi1>, vector<8x32xf32>
    %127 = arith.maximumf %102, %110 : vector<8x32xf32>
    %128 = arith.maximumf %127, %118 : vector<8x32xf32>
    %129 = arith.maximumf %128, %126 : vector<8x32xf32>
    %130 = arith.subf %102, %129 : vector<8x32xf32>
    %131 = math.exp %130 : vector<8x32xf32>
    %132 = arith.subf %110, %129 : vector<8x32xf32>
    %133 = math.exp %132 : vector<8x32xf32>
    %134 = arith.subf %118, %129 : vector<8x32xf32>
    %135 = math.exp %134 : vector<8x32xf32>
    %136 = arith.subf %126, %129 : vector<8x32xf32>
    %137 = math.exp %136 : vector<8x32xf32>
    %138 = arith.addf %131, %133 : vector<8x32xf32>
    %139 = arith.addf %138, %135 : vector<8x32xf32>
    %140 = arith.addf %139, %137 : vector<8x32xf32>
    %141 = tpu.reciprocal %140 {approx = true} : vector<8x32xf32> -> vector<8x32xf32>
    %142 = vector.extract_strided_slice %92 {offsets = [0, 0], sizes = [2, 32], strides = [1, 1]} : vector<8x32xf32> to vector<2x32xf32>
    %143 = tpu.concatenate %142, %142, %142, %142 in 0 : vector<2x32xf32>, vector<2x32xf32>, vector<2x32xf32>, vector<2x32xf32> -> vector<8x32xf32>
    %144 = arith.mulf %131, %143 : vector<8x32xf32>
    %145 = vector.extract_strided_slice %92 {offsets = [2, 0], sizes = [2, 32], strides = [1, 1]} : vector<8x32xf32> to vector<2x32xf32>
    %146 = tpu.concatenate %145, %145, %145, %145 in 0 : vector<2x32xf32>, vector<2x32xf32>, vector<2x32xf32>, vector<2x32xf32> -> vector<8x32xf32>
    %147 = arith.mulf %133, %146 : vector<8x32xf32>
    %148 = arith.addf %144, %147 : vector<8x32xf32>
    %149 = vector.extract_strided_slice %92 {offsets = [4, 0], sizes = [2, 32], strides = [1, 1]} : vector<8x32xf32> to vector<2x32xf32>
    %150 = tpu.concatenate %149, %149, %149, %149 in 0 : vector<2x32xf32>, vector<2x32xf32>, vector<2x32xf32>, vector<2x32xf32> -> vector<8x32xf32>
    %151 = arith.mulf %135, %150 : vector<8x32xf32>
    %152 = arith.addf %148, %151 : vector<8x32xf32>
    %153 = vector.extract_strided_slice %92 {offsets = [6, 0], sizes = [2, 32], strides = [1, 1]} : vector<8x32xf32> to vector<2x32xf32>
    %154 = tpu.concatenate %153, %153, %153, %153 in 0 : vector<2x32xf32>, vector<2x32xf32>, vector<2x32xf32>, vector<2x32xf32> -> vector<8x32xf32>
    %155 = arith.mulf %137, %154 : vector<8x32xf32>
    %156 = arith.addf %152, %155 : vector<8x32xf32>
    %157 = arith.mulf %156, %141 : vector<8x32xf32>
    %158 = vector.broadcast %2 : vector<1x32xf32> to vector<8x32xf32>
    %159 = arith.addf %157, %158 : vector<8x32xf32>
    %cst_28 = arith.constant 0.000000e+00 : f32
    %160 = vector.broadcast %cst_28 : f32 to vector<8x32xf32>
    %161 = arith.cmpf ogt, %159, %160 : vector<8x32xf32>
    %cst_29 = arith.constant 0.000000e+00 : f32
    %162 = vector.broadcast %cst_29 : f32 to vector<8x32xf32>
    %163 = arith.minimumf %159, %162 : vector<8x32xf32>
    %164 = math.exp %163 : vector<8x32xf32>
    %cst_30 = arith.constant 1.000000e+00 : f32
    %165 = vector.broadcast %cst_30 : f32 to vector<8x32xf32>
    %166 = arith.subf %164, %165 : vector<8x32xf32>
    %167 = arith.select %161, %159, %166 : vector<8x32xi1>, vector<8x32xf32>
    %168 = arith.truncf %167 : vector<8x32xf32> to vector<8x32xbf16>
    %169 = vector.extract_strided_slice %168 {offsets = [0, 0], sizes = [2, 32], strides = [1, 1]} : vector<8x32xbf16> to vector<2x32xbf16>
    %c0_31 = arith.constant 0 : index
    %c0_32 = arith.constant 0 : index
    %170 = vector.load %arg4[%c0_31, %c0_32] : memref<128x32xbf16, #tpu.memory_space<vmem>>, vector<32x32xbf16>
    %cst_33 = arith.constant dense<0.000000e+00> : vector<2x32xf32>
    %171 = tpu.matmul %169, %170, %cst_33 {dimension_numbers = #tpu.dot_dimension_numbers<[1], [0], [0], [1], [0, 0, 1, 1], [], []>} : vector<2x32xbf16>, vector<32x32xbf16>, vector<2x32xf32> -> vector<2x32xf32>
    %172 = vector.extract_strided_slice %168 {offsets = [2, 0], sizes = [2, 32], strides = [1, 1]} : vector<8x32xbf16> to vector<2x32xbf16>
    %c32 = arith.constant 32 : index
    %c0_34 = arith.constant 0 : index
    %173 = vector.load %arg4[%c32, %c0_34] : memref<128x32xbf16, #tpu.memory_space<vmem>>, vector<32x32xbf16>
    %cst_35 = arith.constant dense<0.000000e+00> : vector<2x32xf32>
    %174 = tpu.matmul %172, %173, %cst_35 {dimension_numbers = #tpu.dot_dimension_numbers<[1], [0], [0], [1], [0, 0, 1, 1], [], []>} : vector<2x32xbf16>, vector<32x32xbf16>, vector<2x32xf32> -> vector<2x32xf32>
    %175 = arith.addf %171, %174 : vector<2x32xf32>
    %176 = vector.extract_strided_slice %168 {offsets = [4, 0], sizes = [2, 32], strides = [1, 1]} : vector<8x32xbf16> to vector<2x32xbf16>
    %c64 = arith.constant 64 : index
    %c0_36 = arith.constant 0 : index
    %177 = vector.load %arg4[%c64, %c0_36] : memref<128x32xbf16, #tpu.memory_space<vmem>>, vector<32x32xbf16>
    %cst_37 = arith.constant dense<0.000000e+00> : vector<2x32xf32>
    %178 = tpu.matmul %176, %177, %cst_37 {dimension_numbers = #tpu.dot_dimension_numbers<[1], [0], [0], [1], [0, 0, 1, 1], [], []>} : vector<2x32xbf16>, vector<32x32xbf16>, vector<2x32xf32> -> vector<2x32xf32>
    %179 = arith.addf %175, %178 : vector<2x32xf32>
    %180 = vector.extract_strided_slice %168 {offsets = [6, 0], sizes = [2, 32], strides = [1, 1]} : vector<8x32xbf16> to vector<2x32xbf16>
    %c96 = arith.constant 96 : index
    %c0_38 = arith.constant 0 : index
    %181 = vector.load %arg4[%c96, %c0_38] : memref<128x32xbf16, #tpu.memory_space<vmem>>, vector<32x32xbf16>
    %cst_39 = arith.constant dense<0.000000e+00> : vector<2x32xf32>
    %182 = tpu.matmul %180, %181, %cst_39 {dimension_numbers = #tpu.dot_dimension_numbers<[1], [0], [0], [1], [0, 0, 1, 1], [], []>} : vector<2x32xbf16>, vector<32x32xbf16>, vector<2x32xf32> -> vector<2x32xf32>
    %183 = arith.addf %179, %182 : vector<2x32xf32>
    %184 = vector.broadcast %3 : vector<1x32xf32> to vector<2x32xf32>
    %185 = arith.addf %183, %184 : vector<2x32xf32>
    %cst_40 = arith.constant 0.000000e+00 : f32
    %186 = vector.broadcast %cst_40 : f32 to vector<2x32xf32>
    %187 = arith.maximumf %185, %186 : vector<2x32xf32>
    %188 = vector.broadcast %5 : vector<1x32xf32> to vector<2x32xf32>
    %189 = arith.mulf %187, %188 : vector<2x32xf32>
    %cst_41 = arith.constant dense<0.000000e+00> : vector<2xf32>
    %190 = vector.multi_reduction <add>, %189, %cst_41 [1] : vector<2x32xf32> to vector<2xf32>
    %191 = vector.shape_cast %190 : vector<2xf32> to vector<2x1xf32>
    %192 = vector.broadcast %7 : vector<1x1xf32> to vector<2x1xf32>
    %193 = arith.addf %191, %192 : vector<2x1xf32>
    %c0_42 = arith.constant 0 : index
    %c0_43 = arith.constant 0 : index
    %194 = vector.load %arg5[%c0_42, %c0_43] : memref<32x32xbf16, #tpu.memory_space<vmem>>, vector<32x32xbf16>
    %cst_44 = arith.constant dense<0.000000e+00> : vector<8x32xf32>
    %195 = tpu.matmul %168, %194, %cst_44 {dimension_numbers = #tpu.dot_dimension_numbers<[1], [0], [0], [1], [0, 0, 1, 1], [], []>} : vector<8x32xbf16>, vector<32x32xbf16>, vector<8x32xf32> -> vector<8x32xf32>
    %196 = vector.broadcast %4 : vector<1x32xf32> to vector<8x32xf32>
    %197 = arith.addf %195, %196 : vector<8x32xf32>
    %cst_45 = arith.constant 0.000000e+00 : f32
    %198 = vector.broadcast %cst_45 : f32 to vector<8x32xf32>
    %199 = arith.maximumf %197, %198 : vector<8x32xf32>
    %200 = vector.broadcast %6 : vector<1x32xf32> to vector<8x32xf32>
    %201 = arith.mulf %199, %200 : vector<8x32xf32>
    %cst_46 = arith.constant dense<0.000000e+00> : vector<8xf32>
    %202 = vector.multi_reduction <add>, %201, %cst_46 [1] : vector<8x32xf32> to vector<8xf32>
    %203 = vector.shape_cast %202 : vector<8xf32> to vector<8x1xf32>
    %204 = vector.broadcast %8 : vector<1x1xf32> to vector<8x1xf32>
    %205 = arith.addf %203, %204 : vector<8x1xf32>
    %206 = tpu.iota {dimensions = array<i32: 1>} : vector<2x128xi32>
    %c0_i32 = arith.constant 0 : i32
    %207 = vector.broadcast %c0_i32 : i32 to vector<2x128xi32>
    %208 = arith.cmpi eq, %206, %207 : vector<2x128xi32>
    %cst_47 = arith.constant 0.000000e+00 : f32
    %209 = vector.shape_cast %193 : vector<2x1xf32> to vector<2x1xf32>
    %210 = vector.broadcast %209 : vector<2x1xf32> to vector<2x128xf32>
    %211 = vector.broadcast %cst_47 : f32 to vector<2x128xf32>
    %212 = arith.select %208, %210, %211 : vector<2x128xi1>, vector<2x128xf32>
    %c1_i32 = arith.constant 1 : i32
    %213 = vector.broadcast %c1_i32 : i32 to vector<2x128xi32>
    %214 = arith.cmpi eq, %206, %213 : vector<2x128xi32>
    %215 = vector.extract_strided_slice %205 {offsets = [0, 0], sizes = [2, 1], strides = [1, 1]} : vector<8x1xf32> to vector<2x1xf32>
    %216 = vector.shape_cast %215 : vector<2x1xf32> to vector<2x1xf32>
    %217 = vector.broadcast %216 : vector<2x1xf32> to vector<2x128xf32>
    %218 = arith.select %214, %217, %212 : vector<2x128xi1>, vector<2x128xf32>
    %c2_i32 = arith.constant 2 : i32
    %219 = vector.broadcast %c2_i32 : i32 to vector<2x128xi32>
    %220 = arith.cmpi eq, %206, %219 : vector<2x128xi32>
    %221 = vector.extract_strided_slice %205 {offsets = [2, 0], sizes = [2, 1], strides = [1, 1]} : vector<8x1xf32> to vector<2x1xf32>
    %222 = vector.shape_cast %221 : vector<2x1xf32> to vector<2x1xf32>
    %223 = vector.broadcast %222 : vector<2x1xf32> to vector<2x128xf32>
    %224 = arith.select %220, %223, %218 : vector<2x128xi1>, vector<2x128xf32>
    %c3_i32 = arith.constant 3 : i32
    %225 = vector.broadcast %c3_i32 : i32 to vector<2x128xi32>
    %226 = arith.cmpi eq, %206, %225 : vector<2x128xi32>
    %227 = vector.extract_strided_slice %205 {offsets = [4, 0], sizes = [2, 1], strides = [1, 1]} : vector<8x1xf32> to vector<2x1xf32>
    %228 = vector.shape_cast %227 : vector<2x1xf32> to vector<2x1xf32>
    %229 = vector.broadcast %228 : vector<2x1xf32> to vector<2x128xf32>
    %230 = arith.select %226, %229, %224 : vector<2x128xi1>, vector<2x128xf32>
    %c4_i32 = arith.constant 4 : i32
    %231 = vector.broadcast %c4_i32 : i32 to vector<2x128xi32>
    %232 = arith.cmpi eq, %206, %231 : vector<2x128xi32>
    %233 = vector.extract_strided_slice %205 {offsets = [6, 0], sizes = [2, 1], strides = [1, 1]} : vector<8x1xf32> to vector<2x1xf32>
    %234 = vector.shape_cast %233 : vector<2x1xf32> to vector<2x1xf32>
    %235 = vector.broadcast %234 : vector<2x1xf32> to vector<2x128xf32>
    %236 = arith.select %232, %235, %230 : vector<2x128xi1>, vector<2x128xf32>
    %c0_48 = arith.constant 0 : index
    %c0_49 = arith.constant 0 : index
    %237 = vector.load %arg7[%c0_48, %c0_49] : memref<2x128xf32, #tpu.memory_space<vmem>>, vector<2x128xf32>
    tpu.vector_store %arg7[%c0_48, %c0_49], %236 {strides = array<i32>} : memref<2x128xf32, #tpu.memory_space<vmem>>, vector<2x128xf32>,
    return
  }
  func.func @transform_0(%arg0: i32) -> (i32, i32, i32) {
    %c0_i32 = arith.constant 0 : i32
    %c0_i32_0 = arith.constant 0 : i32
    %c0_i32_1 = arith.constant 0 : i32
    return %c0_i32, %arg0, %c0_i32_0 : i32, i32, i32
  }
  func.func @transform_1(%arg0: i32) -> (i32, i32) {
    %c0_i32 = arith.constant 0 : i32
    %c0_i32_0 = arith.constant 0 : i32
    %c0_i32_1 = arith.constant 0 : i32
    return %c0_i32, %c0_i32_0 : i32, i32
  }
  func.func @transform_2(%arg0: i32) -> (i32, i32) {
    %c0_i32 = arith.constant 0 : i32
    %c0_i32_0 = arith.constant 0 : i32
    %c0_i32_1 = arith.constant 0 : i32
    return %c0_i32, %c0_i32_0 : i32, i32
  }
  func.func @transform_3(%arg0: i32) -> (i32, i32) {
    %c0_i32 = arith.constant 0 : i32
    %c0_i32_0 = arith.constant 0 : i32
    %c0_i32_1 = arith.constant 0 : i32
    return %c0_i32, %c0_i32_0 : i32, i32
  }
  func.func @transform_4(%arg0: i32) -> (i32, i32) {
    %c0_i32 = arith.constant 0 : i32
    %c0_i32_0 = arith.constant 0 : i32
    %c0_i32_1 = arith.constant 0 : i32
    return %c0_i32, %c0_i32_0 : i32, i32
  }
  func.func @transform_5(%arg0: i32) -> (i32, i32) {
    %c0_i32 = arith.constant 0 : i32
    %c0_i32_0 = arith.constant 0 : i32
    %c0_i32_1 = arith.constant 0 : i32
    return %c0_i32, %c0_i32_0 : i32, i32
  }
  func.func @transform_6(%arg0: i32) -> (i32, i32) {
    %c0_i32 = arith.constant 0 : i32
    %c0_i32_0 = arith.constant 0 : i32
    return %arg0, %c0_i32 : i32, i32
  }
}

</mosaic_0001>

<bundles_post_ra>
// kernel: tpu_custom_call.1
= control target key start
LH: loop header
LB: loop body
LE: loop exit
PB: predicated region body
PF: predicated region fallthrough
CT: control target
= control target key end

     0   :  { %v41_v1 = vlaneseq  ;;  %v942_v2 = vmov 0.0   ;;  %vm943_vm0 = vmmov 0   ;;  %v944_v7 = vmov 1966171168   ;;  %s1153_s0 = inlined_call_operand.vmem [shape: bf16[4,2,16], index: 0, kind: input, shape index: {}]   ;;  %s1154_s1 = inlined_call_operand.vmem [shape: bf16[16,96], index: 1, kind: input, shape index: {}]   ;;  %s1155_s2 = inlined_call_operand.vmem [shape: bf16[32,96], index: 2, kind: input, shape index: {}]   ;;  %s1156_s3 = inlined_call_operand.vmem [shape: bf16[128,32], index: 3, kind: input, shape index: {}]   ;;  %s1157_s4 = inlined_call_operand.vmem [shape: bf16[32,32], index: 4, kind: input, shape index: {}]   ;;  %s1158_s5 = inlined_call_operand.vmem [shape: f32[8,128], index: 5, kind: input, shape index: {}]   ;;  %s1159_s6 = inlined_call_operand.hbm [shape: f32[2,128], index: 6, kind: output, shape index: {}]  }
   0x1   :  { %v881_v0 = vld [vmem:[%s1154_s1] sm:$0xff]   ;;  %816 = vmatprep.subr.bf16.mxu0 %v942_v2  ;;  %822 = vmatprep.subr.bf16.mxu1 %v942_v2  ;;  %v39_v8 = vunpack.c.l.s4 %v944_v7 }
   0x2   :  { %v26_v3 = vld [vmem:[%s1153_s0] sm:$0x1]  ;;  %v27_v4 = vld [vmem:[%s1153_s0 + $0x1] sm:$0x1]  ;;  %817 = vmatpush3.bf16.msra.mxu0 %v881_v0  ;;  %818 = vmatprep.mubr.msk.bf16.mxu0 %vm943_vm0, %v942_v2  ;;  %v28_v5 = vld [vmem:[%s1153_s0 + $0x2] sm:$0x1] }
   0x3   :  { %v29_v6 = vld [vmem:[%s1153_s0 + $0x3] sm:$0x1]  ;;  %v1005_v9 = vshrl.u32 %v41_v1, 7  ;;  %826 = vmatprep.mubr.msk.bf16.mxu1 %vm943_vm0, %v942_v2  ;;  %830 = vmatprep.subr.bf16.mxu0 %v942_v2  ;;  %v36_v10 = vcombine.low %v26_v3, %v27_v4  ;;  %v40_v12 = vunpack.c.0.s8 %v39_v8 }
   0x4   :  { %v37_v11 = vcombine.low %v28_v5, %v29_v6 }
   0x5   :  { %v43_v13 = vsub.s32 %v40_v12, %v1005_v9 }
   0x7   :  { %v44_v14 = vrot.slane %v36_v10, %v43_v13  ;;  %v51_v15 = vrot.slane %v37_v11, %v43_v13 }
   0x9   :  { %v52_v16 = vcombine.low %v44_v14, %v51_v15 }
   0xa   :  { %11 = vsyncpa [#allocation3], 0  ;;  %vm66_vm1 = vcmask 130048   ;;  %vm117_vm2 = vcmask 1041408   ;;  %vm119_vm3 = vcmask 1043456   ;;  %vm121_vm4 = vcmask 1045504  }
   0xb   :  { %v59_v17 = vrot.slane %v52_v16, %v43_v13  ;;  %s945_s0 = smov 96   ;;  %s946_s30 = smov 32   ;;  %v205_v37 = vsub.s32 0, %v1005_v9  ;;  %v1035_v38 = vld [vmem:[%s1158_s5] sm:$0xff]  ;;  %v883_v41 = vld [vmem:[%s1155_s2 + $0x8] sm:$0xff]   ;;  %vm238_vm10 = vcmask 261120  }
   0xc   :  { %v882_v40 = vld [vmem:[%s1155_s2] sm:$0xff]  }
   0xd   :  { %819 = vmatmul.mubr.msk.bf16.vlgmr.msra.gmra.mrb[0].mxu0 %vm66_vm1, %v59_v17  ;;  %v206_v39 = vrot.slane %v1035_v38, %v205_v37  ;;  %823 = vmatpush3.bf16.msra.mxu1 %v882_v40 }
   0xe   :  { %834 = vmatprep.mubr.msk.bf16.mxu0 %vm943_vm0, %v942_v2  ;;  %824 = vmatprep.subr.bf16.mxu1 %v942_v2 }
  0x11   :  { %825 = vmatpush3.bf16.msra.mxu1 %v883_v41 }
  0x12   :  { %838 = vmatprep.subr.bf16.mxu1 %v942_v2 }
  0xe0   :  { %v104_v18 = vpop.f32.mrb[0].mxu0 }
  0xe1   :  { %v820_v19 = vpop.f32.mrb[1].mxu0  ;;  %v111_v20 = vrot.slane %v104_v18, 6  ;;  %v113_v21 = vrot.slane %v104_v18, 4  ;;  %v115_v22 = vrot.slane %v104_v18, 2 }
  0xe2   :  { %v107_v23 = vpop.f32.mrb[2].mxu0 }
  0xe3   :  { %v821_v24 = vpop.f32.mrb[3].mxu0  ;;  %v142_v25 = vsel %vm117_vm2, %v113_v21, %v115_v22  ;;  %v118_v26 = vsel %vm117_vm2, %v104_v18, %v111_v20  ;;  %v153_v27 = vsel %vm117_vm2, %v111_v20, %v113_v21  ;;  %v131_v28 = vsel %vm117_vm2, %v115_v22, %v104_v18 }
  0xe4   :  { %v143_v29 = vsel %vm119_vm3, %v142_v25, %v104_v18  ;;  %v120_v30 = vsel %vm119_vm3, %v118_v26, %v113_v21  ;;  %v154_v33 = vsel %vm119_vm3, %v153_v27, %v115_v22  ;;  %v132_v34 = vsel %vm119_vm3, %v131_v28, %v111_v20 }
  0xe5   :  { %v144_v31 = vsel %vm121_vm4, %v143_v29, %v111_v20  ;;  %v122_v32 = vsel %vm121_vm4, %v120_v30, %v115_v22  ;;  %v155_v35 = vsel %vm121_vm4, %v154_v33, %v104_v18  ;;  %v133_v36 = vsel %vm121_vm4, %v132_v34, %v113_v21 }
  0xe6   :  { %146 = vrot.lane.b32.xlu1 %v144_v31, %s945_s0  ;;  %124 = vrot.lane.b32.xlu0 %v122_v32, %s945_s0 }
  0xea   :  { %157 = vrot.lane.b32.xlu1 %v155_v35, %s945_s0  ;;  %135 = vrot.lane.b32.xlu0 %v133_v36, %s945_s0 }
  0xee   :  { %187 = vrot.lane.b32.xlu1 %v133_v36, %s946_s30  ;;  %183 = vrot.lane.b32.xlu0 %v122_v32, %s946_s30 }
  0xf2   :  { %197 = vrot.lane.b32.xlu1 %v155_v35, %s946_s30  ;;  %192 = vrot.lane.b32.xlu0 %v144_v31, %s946_s30 }
  0xf6   :  { %208 = vrot.lane.b32.xlu0 %v206_v39, %s946_s30 }
 0x158   :  { %v147_v42 = vpop.permute.xlu1 %146  ;;  %v125_v43 = vpop.permute.xlu0 %124 }
 0x159   :  { %v127_v44 = vadd.f32 %v125_v43, %v104_v18  ;;  %v149_v45 = vadd.f32 %v147_v42, %v104_v18 }
 0x15b   :  { %v129_v48 = vmul.f32 0.2, %v127_v44  ;;  %vm128_vm5 = vcmp.gt.f32.partialorder %v127_v44, 0.0  ;;  %v151_v51 = vmul.f32 0.2, %v149_v45  ;;  %vm150_vm7 = vcmp.gt.f32.partialorder %v149_v45, 0.0 }
 0x15c   :  { %v158_v46 = vpop.permute.xlu1 %157  ;;  %v136_v47 = vpop.permute.xlu0 %135 }
 0x15d   :  { %v160_v49 = vadd.f32 %v158_v46, %v104_v18  ;;  %v138_v50 = vadd.f32 %v136_v47, %v104_v18  ;;  %v130_v53 = vsel %vm128_vm5, %v127_v44, %v129_v48  ;;  %v152_v57 = vsel %vm150_vm7, %v149_v45, %v151_v51 }
 0x15f   :  { %vm139_vm6 = vcmp.gt.f32.partialorder %v138_v50, 0.0  ;;  %v140_v52 = vmul.f32 0.2, %v138_v50  ;;  %v162_v54 = vmul.f32 0.2, %v160_v49  ;;  %vm161_vm8 = vcmp.gt.f32.partialorder %v160_v49, 0.0 }
 0x160   :  { %v188_v12 = vpop.permute.xlu1 %187  ;;  %v184_v13 = vpop.permute.xlu0 %183 }
 0x161   :  { %v141_v55 = vsel %vm139_vm6, %v138_v50, %v140_v52  ;;  %v163_v59 = vsel %vm161_vm8, %v160_v49, %v162_v54 }
 0x162   :  { %v164_v56 = vmax.f32 %v130_v53, %v141_v55 }
 0x164   :  { %v165_v58 = vmax.f32 %v164_v56, %v152_v57  ;;  %v193_v20 = vpop.permute.xlu0 %192  ;;  %v198_v23 = vpop.permute.xlu1 %197 }
 0x166   :  { %v166_v60 = vmax.f32 %v165_v58, %v163_v59 }
 0x168   :  { %v170_v61 = vsub.f32 %v141_v55, %v166_v60  ;;  %v167_v62 = vsub.f32 %v130_v53, %v166_v60  ;;  %v173_v63 = vsub.f32 %v152_v57, %v166_v60  ;;  %v176_v0 = vsub.f32 %v163_v59, %v166_v60  ;;  %v209_v27 = vpop.permute.xlu0 %208  ;;  %v884_v59 = vld [vmem:[%s1156_s3] sm:$0xff]   ;;  %v885_v60 = vld [vmem:[%s1156_s3 + $0x10] sm:$0xff]  }
 0x169   :  { %v374_v57 = vsub.s32 1, %v1005_v9  ;;  %831 = vmatpush3.bf16.msra.mxu0 %v885_v60 }
 0x16a   :  { %v171_v3 = vmul.f32 1.442695, %v170_v61  ;;  %v168_v4 = vmul.f32 1.442695, %v167_v62  ;;  %v174_v5 = vmul.f32 1.442695, %v173_v63  ;;  %832 = vmatprep.subr.bf16.mxu0 %v942_v2 }
 0x16b   :  { %v177_v6 = vmul.f32 1.442695, %v176_v0  ;;  %v375_v58 = vrot.slane %v1035_v38, %v374_v57  ;;  %v886_v61 = vld [vmem:[%s1156_s3 + $0x8] sm:$0xff]   ;;  %v887_v62 = vld [vmem:[%s1156_s3 + $0x18] sm:$0xff]  }
 0x16c   :  { %894 = vpow2.f32 %v171_v3 }
 0x16d   :  { %896 = vpow2.f32 %v168_v4  ;;  %833 = vmatpush3.bf16.msra.mxu0 %v887_v62 }
 0x16e   :  { %898 = vpow2.f32 %v174_v5  ;;  %846 = vmatprep.subr.bf16.mxu0 %v942_v2 }
 0x16f   :  { %900 = vpow2.f32 %v177_v6 }
 0x176   :  { %v895_v7 = vpop.eup %894 }
 0x177   :  { %v897_v8 = vpop.eup %896  ;;  %v190_v16 = vmul.f32 %v895_v7, %v188_v12 }
 0x178   :  { %v179_v10 = vadd.f32 %v897_v8, %v895_v7  ;;  %v899_v11 = vpop.eup %898  ;;  %v186_v17 = vmul.f32 %v897_v8, %v184_v13 }
 0x179   :  { %v901_v15 = vpop.eup %900  ;;  %v195_v21 = vmul.f32 %v899_v11, %v193_v20 }
 0x17a   :  { %v180_v14 = vadd.f32 %v899_v11, %v179_v10  ;;  %v191_v19 = vadd.f32 %v190_v16, %v186_v17  ;;  %v200_v24 = vmul.f32 %v901_v15, %v198_v23 }
 0x17c   :  { %v181_v18 = vadd.f32 %v901_v15, %v180_v14  ;;  %v196_v22 = vadd.f32 %v195_v21, %v191_v19 }
 0x17e   :  { %902 = vrcp.f32 %v181_v18  ;;  %v201_v25 = vadd.f32 %v200_v24, %v196_v22 }
 0x188   :  { %v903_v26 = vpop.eup %902 }
 0x189   :  { %v202_v28 = vmul.f32 %v903_v26, %v201_v25 }
 0x18b   :  { %v211_v29 = vadd.f32 %v209_v27, %v202_v28 }
 0x18d   :  { %v213_v30 = vmin.f32 %v211_v29, 0.0  ;;  %vm212_vm9 = vcmp.gt.f32.partialorder %v211_v29, 0.0 }
 0x18f   :  { %v214_v31 = vmul.f32 1.442695, %v213_v30 }
 0x191   :  { %904 = vpow2.f32 %v214_v31 }
 0x19b   :  { %v905_v32 = vpop.eup %904 }
 0x19c   :  { %v776_v33 = vadd.f32 -1.0, %v905_v32 }
 0x19e   :  { %v217_v34 = vsel %vm212_vm9, %v211_v29, %v776_v33 }
 0x19f   :  { %v218_v35 = vpack.c.bf16 %v217_v34, %v217_v34 }
 0x1a1   :  { %224 = vrot.lane.b32.xlu1 %v218_v35, %s945_s0 }
 0x213   :  { %v225_v36 = vpop.permute.xlu1 %224 }
 0x214   :  { %827 = vmatmul.mubr.msk.bf16.vlgmr.msra.gmra.mrb[0].mxu1 %vm238_vm10, %v225_v36 }
 0x215   :  { %842 = vmatprep.mubr.msk.bf16.mxu1 %vm943_vm0, %v942_v2  ;;  %839 = vmatpush3.bf16.msra.mxu1 %v884_v59 }
 0x216   :  { %840 = vmatprep.subr.bf16.mxu1 %v942_v2 }
 0x219   :  { %841 = vmatpush3.bf16.msra.mxu1 %v886_v61  ;;  %v888_v61 = vld [vmem:[%s1156_s3 + $0x30] sm:$0xff]  }
 0x21a   :  { %854 = vmatprep.subr.bf16.mxu1 %v942_v2 }
 0x2e7   :  { %v276_v37 = vpop.f32.mrb[0].mxu1 }
 0x2e8   :  { %v828_v39 = vpop.f32.mrb[1].mxu1  ;;  %v283_v40 = vrot.slane %v276_v37, 6  ;;  %v285_v41 = vrot.slane %v276_v37, 4  ;;  %v287_v42 = vrot.slane %v276_v37, 2 }
 0x2e9   :  { %v279_v43 = vpop.f32.mrb[2].mxu1 }
 0x2ea   :  { %v829_v44 = vpop.f32.mrb[3].mxu1  ;;  %v300_v45 = vsel %vm117_vm2, %v287_v42, %v276_v37  ;;  %v289_v46 = vsel %vm117_vm2, %v276_v37, %v283_v40  ;;  %v322_v47 = vsel %vm117_vm2, %v283_v40, %v285_v41  ;;  %v311_v48 = vsel %vm117_vm2, %v285_v41, %v287_v42 }
 0x2eb   :  { %v301_v49 = vsel %vm119_vm3, %v300_v45, %v283_v40  ;;  %v290_v50 = vsel %vm119_vm3, %v289_v46, %v285_v41  ;;  %v323_v53 = vsel %vm119_vm3, %v322_v47, %v287_v42  ;;  %v312_v54 = vsel %vm119_vm3, %v311_v48, %v276_v37 }
 0x2ec   :  { %v302_v51 = vsel %vm121_vm4, %v301_v49, %v285_v41  ;;  %v291_v52 = vsel %vm121_vm4, %v290_v50, %v287_v42  ;;  %v324_v55 = vsel %vm121_vm4, %v323_v53, %v276_v37  ;;  %v313_v56 = vsel %vm121_vm4, %v312_v54, %v283_v40 }
 0x2ed   :  { %304 = vrot.lane.b32.xlu1 %v302_v51, %s945_s0  ;;  %293 = vrot.lane.b32.xlu0 %v291_v52, %s945_s0 }
 0x2f1   :  { %326 = vrot.lane.b32.xlu1 %v324_v55, %s945_s0  ;;  %315 = vrot.lane.b32.xlu0 %v313_v56, %s945_s0 }
 0x2f5   :  { %356 = vrot.lane.b32.xlu1 %v302_v51, %s946_s30  ;;  %352 = vrot.lane.b32.xlu0 %v291_v52, %s946_s30 }
 0x2f9   :  { %366 = vrot.lane.b32.xlu1 %v324_v55, %s946_s30  ;;  %361 = vrot.lane.b32.xlu0 %v313_v56, %s946_s30 }
 0x2fd   :  { %377 = vrot.lane.b32.xlu0 %v375_v58, %s946_s30 }
 0x35f   :  { %v305_v63 = vpop.permute.xlu1 %304  ;;  %v294_v0 = vpop.permute.xlu0 %293 }
 0x360   :  { %v307_v3 = vadd.f32 %v305_v63, %v276_v37  ;;  %v296_v4 = vadd.f32 %v294_v0, %v276_v37  ;;  %v889_v63 = vld [vmem:[%s1156_s3 + $0x20] sm:$0xff]  }
 0x362   :  { %vm308_vm11 = vcmp.gt.f32.partialorder %v307_v3, 0.0  ;;  %v309_v5 = vmul.f32 0.2, %v307_v3  ;;  %vm297_vm12 = vcmp.gt.f32.partialorder %v296_v4, 0.0  ;;  %v298_v6 = vmul.f32 0.2, %v296_v4 }
 0x363   :  { %v327_v7 = vpop.permute.xlu1 %326  ;;  %v316_v8 = vpop.permute.xlu0 %315 }
 0x364   :  { %v310_v10 = vsel %vm308_vm11, %v307_v3, %v309_v5  ;;  %v299_v11 = vsel %vm297_vm12, %v296_v4, %v298_v6  ;;  %v329_v12 = vadd.f32 %v327_v7, %v276_v37  ;;  %v318_v13 = vadd.f32 %v316_v8, %v276_v37  ;;  %v890_v3 = vld [vmem:[%s1156_s3 + $0x38] sm:$0xff]   ;;  %v891_v4 = vld [vmem:[%s1156_s3 + $0x28] sm:$0xff]   ;;  %v892_v6 = vld [vmem:[%s1157_s4] sm:$0xff]  }
 0x365   :  { %v333_v16 = vmax.f32 %v299_v11, %v310_v10  ;;  %v893_v8 = vld [vmem:[%s1157_s4 + $0x8] sm:$0xff]   ;;  %s949_s4 = smov [#allocation2]  }
 0x366   :  { %v331_v14 = vmul.f32 0.2, %v329_v12  ;;  %vm319_vm13 = vcmp.gt.f32.partialorder %v318_v13, 0.0  ;;  %v320_v15 = vmul.f32 0.2, %v318_v13  ;;  %vm330_vm14 = vcmp.gt.f32.partialorder %v329_v12, 0.0 }
 0x367   :  { %v357_v33 = vpop.permute.xlu1 %356  ;;  %v353_v34 = vpop.permute.xlu0 %352  ;;  %s766_s29 = sshll.u32 %s949_s4, 4  ;;  %s767_s29 = int_to_ptr.vmem [resolvable:$true] %s766_s29 }
 0x368   :  { %v321_v17 = vsel %vm319_vm13, %v318_v13, %v320_v15  ;;  %v332_v19 = vsel %vm330_vm14, %v329_v12, %v331_v14  ;;  %p923_p1 = scmp.lt.s32.totalorder %s767_s29, %s767_s29 }
 0x369   :  { %v334_v18 = vmax.f32 %v333_v16, %v321_v17 }
 0x36b   :  { %v335_v20 = vmax.f32 %v334_v18, %v332_v19  ;;  %v362_v42 = vpop.permute.xlu0 %361  ;;  %v367_v45 = vpop.permute.xlu1 %366 }
 0x36d   :  { %v342_v21 = vsub.f32 %v321_v17, %v335_v20  ;;  %v339_v22 = vsub.f32 %v310_v10, %v335_v20  ;;  %v336_v23 = vsub.f32 %v299_v11, %v335_v20  ;;  %v345_v26 = vsub.f32 %v332_v19, %v335_v20 }
 0x36e   :  { %v640_v19 = vsub.s32 2, %v1005_v9 }
 0x36f   :  { %v340_v24 = vmul.f32 1.442695, %v339_v22  ;;  %v337_v25 = vmul.f32 1.442695, %v336_v23  ;;  %v343_v27 = vmul.f32 1.442695, %v342_v21  ;;  %v378_v49 = vpop.permute.xlu0 %377 }
 0x370   :  { %v346_v28 = vmul.f32 1.442695, %v345_v26 }
 0x371   :  { %906 = vpow2.f32 %v340_v24 }
 0x372   :  { %908 = vpow2.f32 %v337_v25 }
 0x373   :  { %910 = vpow2.f32 %v343_v27  ;;  %v664_v27 = vsub.s32 3, %v1005_v9 }
 0x374   :  { %912 = vpow2.f32 %v346_v28  ;;  %v646_v28 = vsub.s32 4, %v1005_v9 }
 0x37b   :  { %v907_v29 = vpop.eup %906 }
 0x37c   :  { %v909_v30 = vpop.eup %908  ;;  %v359_v37 = vmul.f32 %v907_v29, %v357_v33  ;;  %v665_v33 = vrot.slane %v1035_v38, %v664_v27 }
 0x37d   :  { %v348_v31 = vadd.f32 %v909_v30, %v907_v29  ;;  %v911_v32 = vpop.eup %910  ;;  %v355_v39 = vmul.f32 %v909_v30, %v353_v34  ;;  %v647_v34 = vrot.slane %v1035_v38, %v646_v28 }
 0x37e   :  { %v913_v36 = vpop.eup %912  ;;  %v364_v43 = vmul.f32 %v911_v32, %v362_v42 }
 0x37f   :  { %v349_v35 = vadd.f32 %v911_v32, %v348_v31  ;;  %v360_v41 = vadd.f32 %v359_v37, %v355_v39  ;;  %v369_v46 = vmul.f32 %v913_v36, %v367_v45 }
 0x381   :  { %v350_v40 = vadd.f32 %v913_v36, %v349_v35  ;;  %v365_v44 = vadd.f32 %v364_v43, %v360_v41  ;;  %v721_v35 = vsub.s32 5, %v1005_v9 }
 0x383   :  { %914 = vrcp.f32 %v350_v40  ;;  %v370_v47 = vadd.f32 %v369_v46, %v365_v44  ;;  %v722_v42 = vrot.slane %v1035_v38, %v721_v35 }
 0x38d   :  { %v915_v48 = vpop.eup %914 }
 0x38e   :  { %v371_v50 = vmul.f32 %v915_v48, %v370_v47 }
 0x390   :  { %v380_v51 = vadd.f32 %v378_v49, %v371_v50  ;;  %v947_v49 = vmov 0   ;;  %v948_v50 = vmov 1  }
 0x391   :  { %878 = vset.pattern.permute.xlu0 %v947_v49  ;;  %879 = vset.pattern.permute.xlu1 %v948_v50 }
 0x392   :  { %v382_v52 = vmin.f32 %v380_v51, 0.0  ;;  %vm381_vm15 = vcmp.gt.f32.partialorder %v380_v51, 0.0 }
 0x394   :  { %v383_v53 = vmul.f32 1.442695, %v382_v52 }
 0x396   :  { %916 = vpow2.f32 %v383_v53 }
 0x3a0   :  { %v917_v54 = vpop.eup %916 }
 0x3a1   :  { %v780_v55 = vadd.f32 -1.0, %v917_v54 }
 0x3a3   :  { %v386_v56 = vsel %vm381_vm15, %v380_v51, %v780_v55  ;;  %v655_v51 = vsub.s32 6, %v1005_v9 }
 0x3a4   :  { %v387_v57 = vpack.c.bf16 %v386_v56, %v386_v56 }
 0x3a5   :  { %v656_v52 = vrot.slane %v1035_v38, %v655_v51 }
 0x3a6   :  { %455 = vrot.lane.b32.xlu0 %v387_v57, %s945_s0  ;;  %v397_v58 = vrot.slane %v387_v57, 1  ;;  %v579_v59 = vrot.slane %v387_v57, 3  ;;  %v516_v60 = vrot.slane %v387_v57, 2  ;;  %v729_v57 = vand.u32 127, %v41_v1 }
 0x3a8   :  { %398 = vrot.lane.b32.xlu1 %v397_v58, %s945_s0  ;;  %vm730_vm1 = vcmp.eq.s32.totalorder %v729_v57, 0  ;;  %vm737_vm2 = vcmp.eq.s32.totalorder %v729_v57, 1  ;;  %vm744_vm3 = vcmp.eq.s32.totalorder %v729_v57, 2  ;;  %vm749_vm4 = vcmp.eq.s32.totalorder %v729_v57, 3 }
 0x3a9   :  { %vm754_vm5 = vcmp.eq.s32.totalorder %v729_v57, 4 }
 0x3aa   :  { %580 = vrot.lane.b32.xlu0 %v579_v59, %s945_s0 }
 0x3ac   :  { %517 = vrot.lane.b32.xlu1 %v516_v60, %s945_s0  ;;  %s918_s0 = scalar_lea.vmem %s767_s29, 32 }
 0x3ad   :  { %p919_p0 = scmp.ne.s32.totalorder %s767_s29, %s918_s0  ;;  %p924_p2 = scmp.lt.s32.totalorder %s918_s0, %s918_s0 }
 0x3af   :  { %p925_p3 = por %p924_p2, %p923_p1 }
 0x3b1   :  { %p926_p4 = pnand %p925_p3, %p919_p0 }
 0x418   :  { %v456_v62 = vpop.permute.xlu0 %455 }
 0x419   :  { %843 = vmatmul.mubr.msk.bf16.vlgmr.msra.gmra.mrb[4].mxu1 %vm238_vm10, %v456_v62 }
 0x41a   :  { %855 = vmatpush3.bf16.msra.mxu1 %v888_v61  ;;  %v399_v0 = vpop.permute.xlu1 %398  ;;  %858 = vmatprep.mubr.msk.bf16.mxu1 %vm943_vm0, %v942_v2 }
 0x41b   :  { %835 = vmatmul.mubr.msk.bf16.vlgmr.msra.gmra.mrb[4].mxu0 %vm238_vm10, %v399_v0  ;;  %856 = vmatprep.subr.bf16.mxu1 %v942_v2 }
 0x41c   :  { %847 = vmatpush3.bf16.msra.mxu0 %v889_v63  ;;  %850 = vmatprep.mubr.msk.bf16.mxu0 %vm943_vm0, %v942_v2  ;;  %v581_v5 = vpop.permute.xlu0 %580 }
 0x41d   :  { %848 = vmatprep.subr.bf16.mxu0 %v942_v2 }
 0x41e   :  { %857 = vmatpush3.bf16.msra.mxu1 %v890_v3  ;;  %v518_v7 = vpop.permute.xlu1 %517 }
 0x420   :  { %849 = vmatpush3.bf16.msra.mxu0 %v891_v4 }
 0x421   :  { %859 = vmatmul.mubr.msk.bf16.vlgmr.msra.gmra.mrb[8].mxu1 %vm238_vm10, %v581_v5  ;;  %862 = vmatprep.subr.bf16.mxu0 %v942_v2 }
 0x423   :  { %851 = vmatmul.mubr.msk.bf16.vlgmr.msra.gmra.mrb[8].mxu0 %vm238_vm10, %v518_v7 }
 0x424   :  { %863 = vmatpush3.bf16.msra.mxu0 %v892_v6  ;;  %866 = vmatprep.mubr.msk.bf16.mxu0 %vm943_vm0, %v942_v2  ;;  %vm649_vm0 = vcmask 254976  }
 0x425   :  { %864 = vmatprep.subr.bf16.mxu0 %v942_v2  ;;  %v641_v2 = vrot.slane %v1035_v38, %v640_v19 }
 0x428   :  { %865 = vmatpush3.bf16.msra.mxu0 %v893_v8 }
 0x42b   :  { %867 = vmatmul.mubr.msk.bf16.vlgmr.msra.gmra.mrb[12].mxu0 %vm238_vm10, %v456_v62 }
 0x4ec   :  { %v506_v10 = vpop.f32.mrb[4].mxu1 }
 0x4ed   :  { %v844_v11 = vpop.f32.mrb[5].mxu1 }
 0x4ee   :  { %v449_v12 = vpop.f32.mrb[4].mxu0  ;;  %v509_v13 = vpop.f32.mrb[6].mxu1 }
 0x4ef   :  { %v507_v14 = vadd.f32 %v506_v10, %v449_v12  ;;  %v836_v15 = vpop.f32.mrb[5].mxu0  ;;  %v845_v16 = vpop.f32.mrb[7].mxu1 }
 0x4f0   :  { %v452_v17 = vpop.f32.mrb[6].mxu0 }
 0x4f1   :  { %v837_v18 = vpop.f32.mrb[7].mxu0 }
 0x4f4   :  { %v631_v20 = vpop.f32.mrb[8].mxu1 }
 0x4f5   :  { %v860_v21 = vpop.f32.mrb[9].mxu1 }
 0x4f6   :  { %v568_v22 = vpop.f32.mrb[8].mxu0  ;;  %v634_v23 = vpop.f32.mrb[10].mxu1 }
 0x4f7   :  { %v574_v24 = vadd.f32 %v568_v22, %v507_v14  ;;  %v852_v25 = vpop.f32.mrb[9].mxu0  ;;  %v861_v26 = vpop.f32.mrb[11].mxu1 }
 0x4f8   :  { %v571_v29 = vpop.f32.mrb[10].mxu0 }
 0x4f9   :  { %v637_v30 = vadd.f32 %v631_v20, %v574_v24  ;;  %v853_v31 = vpop.f32.mrb[11].mxu0 }
 0x4fb   :  { %v642_v32 = vadd.f32 %v641_v2, %v637_v30 }
 0x4fd   :  { %v643_v36 = vmax.f32 %v642_v32, 0.0 }
 0x4fe   :  { %v712_v37 = vpop.f32.mrb[12].mxu0 }
 0x4ff   :  { %v713_v39 = vadd.f32 %v712_v37, %v665_v33  ;;  %v868_v40 = vpop.f32.mrb[13].mxu0  ;;  %v648_v41 = vmul.f32 %v647_v34, %v643_v36 }
 0x500   :  { %v715_v43 = vpop.f32.mrb[14].mxu0 }
 0x501   :  { %v718_v44 = vmax.f32 %v713_v39, 0.0  ;;  %v869_v45 = vpop.f32.mrb[15].mxu0  ;;  %v650_v46 = vsel %vm649_vm0, %v648_v41, 0.0 }
 0x502   :  { %651 = vadd.xlane.f32.xlu1 %v650_v46 }
 0x503   :  { %v723_v47 = vmul.f32 %v722_v42, %v718_v44 }
 0x505   :  { %v724_v48 = vsel %vm238_vm10, %v723_v47, 0.0 }
 0x506   :  { %725 = vadd.xlane.f32.xlu0 %v724_v48 }
 0x58f   :  { %v652_v53 = vpop.xlane.xlu1 %651 }
 0x590   :  { %v657_v54 = vadd.f32 %v656_v52, %v652_v53 }
 0x592   :  { %733 = vperm.xlu0 %878, %v657_v54  }
 0x593   :  { %v726_v55 = vpop.xlane.xlu0 %725 }
 0x594   :  { %v727_v56 = vadd.f32 %v726_v55, %v656_v52 }
 0x596   :  { %740 = vperm.xlu1 %879, %v727_v56   ;;  %880 = vset.pattern.permute.xlu0 %v948_v50 }
 0x611   :  { %v734_v58 = vpop.permute.xlu0 %733 }
 0x612   :  { %v736_v59 = vsel %vm730_vm1, %v734_v58, 0.0 }
 0x615   :  { %v741_v60 = vpop.permute.xlu1 %740 }
 0x616   :  { %v743_v61 = vsel %vm737_vm2, %v741_v60, %v736_v59 }
 0x617   :  { %v746_v62 = vrot.slane %v743_v61, 6 }
 0x619   :  { %v748_v9 = vsel %vm744_vm3, %v741_v60, %v746_v62 }
 0x61a   :  { %v751_v38 = vrot.slane %v748_v9, 6 }
 0x61c   :  { %v753_v63 = vsel %vm749_vm4, %v741_v60, %v751_v38 }
 0x61d   :  { %v756_v0 = vrot.slane %v753_v63, 6 }
 0x61f   :  { %v758_v3 = vsel %vm754_vm5, %v741_v60, %v756_v0 }
 0x620   :  { %759 = vst [vmem:[#allocation2 - $0x6] sm:$0xc0] %v758_v3 }
 0x621   :  { %929 = shalt.err (!%p926_p4)
}
 0x622   :  { %s930_s8 = scalar_lea.hbm %s1159_s6, 32 }
 0x623   :  { %p931_p5 = scmp.ne.s32.totalorder %s1159_s6, %s930_s8  ;;  %p934_p6 = scmp.lt.u32.totalorder %s930_s8, %s1159_s6 }
 0x625   :  { %p936_p7 = pnand %p934_p6, %p931_p5 }
 0x627   :  { %939 = shalt.err (!%p936_p7)
}
 0x628   :  { %769 = dma.vmem_to_hbm [thread:$0]  %s767_s29, 32, %s1159_s6, [#allocation3]  }
 0x629   :  { %940 = dma.done.wait [#allocation3], 32  }
 0x62a   :  { %941 = vsyncadd [#allocation3], 4294967264 }
 0x62b   :  { %773 = vsyncpa [#allocation3], 1 }

</bundles_post_ra>
